<compile_context>
chip_gen: v7x
topology: tpu7x:2x2x1
jax: 0.10.0
libtpu: 0.0.40
codegen_flags: <defaults>
</compile_context>

<pallas_src>
import math
from functools import partial

import jax
import jax.numpy as jnp
from jax.experimental import pallas as pl
from jax.experimental.pallas import tpu as pltpu

# ---- packed bf16 parameter slab layout (rows, 128) ----
# All row offsets are multiples of 16 so they stay aligned with bf16 sublane
# packing (one bf16 vreg = [16, 128]).
_LANES = 128
_OUT_LANES = 8      # 3 real logits, padded to 8 output columns
_W1_OFF = 0         # (4, 16)   -> rows   0:4,   cols 0:16
_B1_OFF = 16        # (1, 16)   -> row   16
_W2_OFF = 32        # (16, 12)  -> rows  32:48,  cols 0:12 (read back as (128,128))
_B2_OFF = 160       # (1, 12)   -> row  160
_W3_OFF = 176       # (12, 3)   -> rows 176:188, cols 0:3  (read back as (128,128))
_B3_OFF = 304       # (1, 3)    -> row  304
_P_ROWS = 320       # slab = 320 x 128 bf16 = 80 KiB (VMEM-resident)


def mlp_kernel(x_ref, p_ref, o_ref):
    # One batch tile; the params slab is identical for every grid step.
    x = x_ref[...]                                            # (TILE_B, 4) f32

    w1 = p_ref[pl.ds(_W1_OFF, 4), :].astype(jnp.float32)      # (4, 128), cols 16: == 0
    b1 = p_ref[pl.ds(_B1_OFF, 1), :].astype(jnp.float32)      # (1, 128)
    w2 = p_ref[pl.ds(_W2_OFF, _LANES), :]                     # (128, 128) bf16, zero-padded
    b2 = p_ref[pl.ds(_B2_OFF, 1), :].astype(jnp.float32)
    w3 = p_ref[pl.ds(_W3_OFF, _LANES), :]                     # (128, 128) bf16, zero-padded
    b3 = p_ref[pl.ds(_B3_OFF, 1), :].astype(jnp.float32)

    # Layer 1 (K=4): keep it on the VPU as 4 broadcast multiply-adds instead of
    # an MXU push that would use ~3% of the array.
    h1 = b1
    for k in range(4):
        h1 = h1 + x[:, k:k + 1] * w1[k:k + 1, :]
    h1 = jnp.maximum(h1, 0.0).astype(jnp.bfloat16)            # (TILE_B, 128)

    # Layers 2/3: single-pass bf16 MXU dots, f32 accumulation.  Zero-padded
    # lanes/rows stay exactly zero through bias + ReLU, so the padded 128-wide
    # dots are exact.
    h2 = jnp.dot(h1, w2, preferred_element_type=jnp.float32) + b2
    h2 = jnp.maximum(h2, 0.0).astype(jnp.bfloat16)
    y = jnp.dot(h2, w3, preferred_element_type=jnp.float32) + b3

    # Compact store: only the first 8 columns (3 real + 5 pad) go back to HBM.
    o_ref[...] = y[:, :_OUT_LANES].astype(o_ref.dtype)


def pack_params(params):
    """Pack (W1,b1,W2,b2,W3,b3) into one zero-padded, lane-dense bf16 slab.

    Called once at init; NOT on the per-forward path.
    """
    p = jnp.zeros((_P_ROWS, _LANES), jnp.bfloat16)
    offsets = (_W1_OFF, _B1_OFF, _W2_OFF, _B2_OFF, _W3_OFF, _B3_OFF)
    for arr, off in zip(params, offsets):
        p = jax.lax.dynamic_update_slice(p, arr.astype(jnp.bfloat16), (off, 0))
    return p


def _round_up(n, m):
    return ((n + m - 1) // m) * m


@partial(jax.jit, static_argnames=("tile_b",))
def nn_forward(x, packed_params, *, tile_b=4096):
    """Forward pass of the 4->16->12->3 MLP as a single batch-tiled Pallas kernel."""
    batch, in_features = x.shape
    assert in_features == 4

    # Batch tile: large enough to amortize per-step overhead, small enough to
    # bound VMEM (~10 MiB at tile_b=4096 incl. double buffers -- safe under the
    # 32 MiB default scoped limit on v6e/v7x).  Cap so the grid has >= 2 steps
    # when possible so dimension_semantics=("parallel",) can use both v7x TCs.
    if batch <= 8:
        tile_b = batch
    else:
        tile_b = min(tile_b, max(8, _round_up(pl.cdiv(batch, 2), 8)))
    grid = (pl.cdiv(batch, tile_b),)

    flops = 2 * batch * (4 * _LANES + _LANES * _LANES + _LANES * _LANES)
    bytes_accessed = (batch * 4 * 4            # x (f32)
                      + batch * _OUT_LANES * 4  # compact output (f32)
                      + _P_ROWS * _LANES * 2)   # bf16 param slab (once)

    out = pl.pallas_call(
        mlp_kernel,
        out_shape=jax.ShapeDtypeStruct((batch, _OUT_LANES), jnp.float32),
        grid=grid,
        in_specs=[
            pl.BlockSpec((tile_b, 4), lambda i: (i, 0)),
            # constant index_map: the slab is DMA'd once and reused every step
            pl.BlockSpec((_P_ROWS, _LANES), lambda i: (0, 0)),
        ],
        out_specs=pl.BlockSpec((tile_b, _OUT_LANES), lambda i: (i, 0)),
        compiler_params=pltpu.CompilerParams(
            # shards batch tiles across both TensorCores on v7x; no-op on v5e/v6e
            dimension_semantics=("parallel",),
        ),
        cost_estimate=pl.CostEstimate(
            flops=flops, transcendentals=0, bytes_accessed=bytes_accessed),
    )(x, packed_params)

    return out[:, :3]


def init_params(key):
    """Deterministic init matching PyTorch nn.Linear defaults
    (uniform(-1/sqrt(fan_in), 1/sqrt(fan_in)) for weight and bias).
    Weights are returned already transposed to (in, out); biases are (1, out)."""
    dims = [(4, 16), (16, 12), (12, 3)]
    params = []
    for fan_in, fan_out in dims:
        key, kw, kb = jax.random.split(key, 3)
        bound = 1.0 / math.sqrt(fan_in)
        w = jax.random.uniform(kw, (fan_in, fan_out), jnp.float32, -bound, bound)
        b = jax.random.uniform(kb, (1, fan_out), jnp.float32, -bound, bound)
        params.extend([w, b])
    return tuple(params)


def reference_forward(x, params):
    w1, b1, w2, b2, w3, b3 = params
    h1 = jnp.maximum(x @ w1 + b1, 0.0)
    h2 = jnp.maximum(h1 @ w2 + b2, 0.0)
    return h2 @ w3 + b3


if __name__ == "__main__":
    key = jax.random.PRNGKey(0)
    key, kx = jax.random.split(key)

    batch = 8          # small batch of iris-like rows
    in_features = 4    # sepal/petal length & width
    x = jax.random.uniform(kx, (batch, in_features), jnp.float32, 0.0, 8.0)

    params = init_params(key)
    packed = pack_params(params)          # packed once, outside the forward path

    y = nn_forward(x, packed)
    y = jax.block_until_ready(y)

    y_ref = reference_forward(x, params)  # f32 reference
    assert y.shape == (batch, 3)
    # bf16 weights / activations in layers 2-3 -> loosen tolerance vs f32 ref.
    assert jnp.allclose(y, y_ref, atol=5e-2, rtol=5e-2)

    print("KERNEL_OK")
</pallas_src>

<mosaic_0001>
module attributes {stable_mosaic.version = 11 : i64} {
  func.func @mlp_kernel(%arg0: i32, %arg1: memref<8x4xf32, #tpu.memory_space<vmem>>, %arg2: memref<320x128xbf16, #tpu.memory_space<vmem>>, %arg3: memref<8x8xf32, #tpu.memory_space<vmem>>) attributes {dimension_semantics = [#tpu.dimension_semantics<parallel>], iteration_bounds = array<i64: 1>, scalar_prefetch = 0 : i64, scratch_operands = 0 : i64, tpu.core_type = #tpu.core_type<tc>, window_params = [{transform_indices = @transform_0, window_bounds = array<i64: 8, 4>}, {pipeline_mode = #tpu.pipeline_mode<synchronous>, transform_indices = @transform_1, window_bounds = array<i64: 320, 128>}, {transform_indices = @transform_2, window_bounds = array<i64: 8, 8>}]} {
    %c0 = arith.constant 0 : index
    %c0_0 = arith.constant 0 : index
    %0 = vector.load %arg1[%c0, %c0_0] : memref<8x4xf32, #tpu.memory_space<vmem>>, vector<8x4xf32>
    %c0_1 = arith.constant 0 : index
    %c0_2 = arith.constant 0 : index
    %1 = vector.load %arg2[%c0_1, %c0_2] : memref<320x128xbf16, #tpu.memory_space<vmem>>, vector<4x128xbf16>
    %2 = arith.extf %1 : vector<4x128xbf16> to vector<4x128xf32>
    %c16 = arith.constant 16 : index
    %c0_3 = arith.constant 0 : index
    %3 = vector.load %arg2[%c16, %c0_3] : memref<320x128xbf16, #tpu.memory_space<vmem>>, vector<1x128xbf16>
    %4 = arith.extf %3 : vector<1x128xbf16> to vector<1x128xf32>
    %c32 = arith.constant 32 : index
    %c0_4 = arith.constant 0 : index
    %5 = vector.load %arg2[%c32, %c0_4] : memref<320x128xbf16, #tpu.memory_space<vmem>>, vector<128x128xbf16>
    %c160 = arith.constant 160 : index
    %c0_5 = arith.constant 0 : index
    %6 = vector.load %arg2[%c160, %c0_5] : memref<320x128xbf16, #tpu.memory_space<vmem>>, vector<1x128xbf16>
    %7 = arith.extf %6 : vector<1x128xbf16> to vector<1x128xf32>
    %c176 = arith.constant 176 : index
    %c0_6 = arith.constant 0 : index
    %8 = vector.load %arg2[%c176, %c0_6] : memref<320x128xbf16, #tpu.memory_space<vmem>>, vector<128x128xbf16>
    %c304 = arith.constant 304 : index
    %c0_7 = arith.constant 0 : index
    %9 = vector.load %arg2[%c304, %c0_7] : memref<320x128xbf16, #tpu.memory_space<vmem>>, vector<1x128xbf16>
    %10 = arith.extf %9 : vector<1x128xbf16> to vector<1x128xf32>
    %11 = vector.extract_strided_slice %0 {offsets = [0, 0], sizes = [8, 1], strides = [1, 1]} : vector<8x4xf32> to vector<8x1xf32>
    %12 = vector.extract_strided_slice %2 {offsets = [0, 0], sizes = [1, 128], strides = [1, 1]} : vector<4x128xf32> to vector<1x128xf32>
    %13 = vector.broadcast %11 : vector<8x1xf32> to vector<8x128xf32>
    %14 = vector.broadcast %12 : vector<1x128xf32> to vector<8x128xf32>
    %15 = arith.mulf %13, %14 : vector<8x128xf32>
    %16 = vector.broadcast %4 : vector<1x128xf32> to vector<8x128xf32>
    %17 = arith.addf %16, %15 : vector<8x128xf32>
    %18 = vector.extract_strided_slice %0 {offsets = [0, 1], sizes = [8, 1], strides = [1, 1]} : vector<8x4xf32> to vector<8x1xf32>
    %19 = vector.extract_strided_slice %2 {offsets = [1, 0], sizes = [1, 128], strides = [1, 1]} : vector<4x128xf32> to vector<1x128xf32>
    %20 = vector.broadcast %18 : vector<8x1xf32> to vector<8x128xf32>
    %21 = vector.broadcast %19 : vector<1x128xf32> to vector<8x128xf32>
    %22 = arith.mulf %20, %21 : vector<8x128xf32>
    %23 = arith.addf %17, %22 : vector<8x128xf32>
    %24 = vector.extract_strided_slice %0 {offsets = [0, 2], sizes = [8, 1], strides = [1, 1]} : vector<8x4xf32> to vector<8x1xf32>
    %25 = vector.extract_strided_slice %2 {offsets = [2, 0], sizes = [1, 128], strides = [1, 1]} : vector<4x128xf32> to vector<1x128xf32>
    %26 = vector.broadcast %24 : vector<8x1xf32> to vector<8x128xf32>
    %27 = vector.broadcast %25 : vector<1x128xf32> to vector<8x128xf32>
    %28 = arith.mulf %26, %27 : vector<8x128xf32>
    %29 = arith.addf %23, %28 : vector<8x128xf32>
    %30 = vector.extract_strided_slice %0 {offsets = [0, 3], sizes = [8, 1], strides = [1, 1]} : vector<8x4xf32> to vector<8x1xf32>
    %31 = vector.extract_strided_slice %2 {offsets = [3, 0], sizes = [1, 128], strides = [1, 1]} : vector<4x128xf32> to vector<1x128xf32>
    %32 = vector.broadcast %30 : vector<8x1xf32> to vector<8x128xf32>
    %33 = vector.broadcast %31 : vector<1x128xf32> to vector<8x128xf32>
    %34 = arith.mulf %32, %33 : vector<8x128xf32>
    %35 = arith.addf %29, %34 : vector<8x128xf32>
    %cst = arith.constant 0.000000e+00 : f32
    %36 = vector.broadcast %cst : f32 to vector<8x128xf32>
    %37 = arith.maximumf %35, %36 : vector<8x128xf32>
    %38 = arith.truncf %37 : vector<8x128xf32> to vector<8x128xbf16>
    %cst_8 = arith.constant dense<0.000000e+00> : vector<8x128xf32>
    %39 = tpu.matmul %38, %5, %cst_8 {dimension_numbers = #tpu.dot_dimension_numbers<[1], [0], [0], [1], [0, 0, 1, 1], [], []>} : vector<8x128xbf16>, vector<128x128xbf16>, vector<8x128xf32> -> vector<8x128xf32>
    %40 = vector.broadcast %7 : vector<1x128xf32> to vector<8x128xf32>
    %41 = arith.addf %39, %40 : vector<8x128xf32>
    %cst_9 = arith.constant 0.000000e+00 : f32
    %42 = vector.broadcast %cst_9 : f32 to vector<8x128xf32>
    %43 = arith.maximumf %41, %42 : vector<8x128xf32>
    %44 = arith.truncf %43 : vector<8x128xf32> to vector<8x128xbf16>
    %cst_10 = arith.constant dense<0.000000e+00> : vector<8x128xf32>
    %45 = tpu.matmul %44, %8, %cst_10 {dimension_numbers = #tpu.dot_dimension_numbers<[1], [0], [0], [1], [0, 0, 1, 1], [], []>} : vector<8x128xbf16>, vector<128x128xbf16>, vector<8x128xf32> -> vector<8x128xf32>
    %46 = vector.broadcast %10 : vector<1x128xf32> to vector<8x128xf32>
    %47 = arith.addf %45, %46 : vector<8x128xf32>
    %48 = vector.extract_strided_slice %47 {offsets = [0, 0], sizes = [8, 8], strides = [1, 1]} : vector<8x128xf32> to vector<8x8xf32>
    %c0_11 = arith.constant 0 : index
    %c0_12 = arith.constant 0 : index
    %49 = vector.load %arg3[%c0_11, %c0_12] : memref<8x8xf32, #tpu.memory_space<vmem>>, vector<8x8xf32>
    tpu.vector_store %arg3[%c0_11, %c0_12], %48 {strides = array<i32>} : memref<8x8xf32, #tpu.memory_space<vmem>>, vector<8x8xf32>,
    return
  }
  func.func @transform_0(%arg0: i32) -> (i32, i32) {
    %c0_i32 = arith.constant 0 : i32
    %c0_i32_0 = arith.constant 0 : i32
    return %arg0, %c0_i32 : i32, i32
  }
  func.func @transform_1(%arg0: i32) -> (i32, i32) {
    %c0_i32 = arith.constant 0 : i32
    %c0_i32_0 = arith.constant 0 : i32
    %c0_i32_1 = arith.constant 0 : i32
    return %c0_i32, %c0_i32_0 : i32, i32
  }
  func.func @transform_2(%arg0: i32) -> (i32, i32) {
    %c0_i32 = arith.constant 0 : i32
    %c0_i32_0 = arith.constant 0 : i32
    return %arg0, %c0_i32 : i32, i32
  }
}

</mosaic_0001>

<bundles_post_ra>
// kernel: nn_forward.1
= control target key start
LH: loop header
LB: loop body
LE: loop exit
PB: predicated region body
PF: predicated region fallthrough
CT: control target
= control target key end

     0   :  { %7 = vsyncpa [#allocation3], 0  ;;  %s435_s9 = smov [#allocation2]   ;;  %s495_s0 = inlined_call_operand.vmem [shape: f32[8,4], index: 0, kind: input, shape index: {}]   ;;  %s496_s1 = inlined_call_operand.hbm [shape: bf16[320,128], index: 1, kind: input, shape index: {}]   ;;  %s497_s2 = inlined_call_operand.vmem [shape: f32[8,8], index: 2, kind: output, shape index: {}]  }
   0x1   :  { %s15_s10 = sshll.u32 %s435_s9, 4  ;;  %s411_s13 = scalar_lea.hbm %s496_s1, 2560  ;;  %s16_s10 = int_to_ptr.vmem [resolvable:$true] %s15_s10 }
   0x2   :  { %p412_p0 = scmp.ne.s32.totalorder %s496_s1, %s411_s13  ;;  %p415_p1 = scmp.lt.u32.totalorder %s411_s13, %s496_s1 }
   0x4   :  { %p417_p2 = pnand %p415_p1, %p412_p0 }
   0x6   :  { %420 = shalt.err (!%p417_p2)
}
   0x7   :  { %s421_s18 = scalar_lea.vmem %s16_s10, 2560  ;;  %p426_p4 = scmp.lt.s32.totalorder %s16_s10, %s16_s10 }
   0x8   :  { %p422_p3 = scmp.ne.s32.totalorder %s16_s10, %s421_s18  ;;  %p427_p5 = scmp.lt.s32.totalorder %s421_s18, %s421_s18 }
   0xa   :  { %p428_p6 = por %p427_p5, %p426_p4 }
   0xc   :  { %p429_p7 = pnand %p428_p6, %p422_p3 }
   0xe   :  { %432 = shalt.err (!%p429_p7)
}
   0xf   :  { %s436_s19 = smov 64   ;;  %s437_s20 = smov 4  }
  0x10   :  { %21 = dma.hbm_to_vmem [thread:$0]  %s496_s1, 2560, %s16_s10, [#allocation3], %s436_s19, %s436_s19, %s437_s20  }
  0x11   :  { %433 = dma.done.wait [#allocation3], 2560  }
  0x12   :  { %434 = vsyncadd [#allocation3], 4294964736  ;;  %v438_v0 = vmov 0   ;;  %v439_v1 = vmov 2   ;;  %v440_v2 = vmov 0.0   ;;  %v26_v3 = vld [vmem:[%s495_s0] sm:$0xff]  ;;  %v72_v20 = vlaneseq }
  0x13   :  { %390 = vset.pattern.permute.xlu0 %v438_v0  ;;  %392 = vset.pattern.permute.xlu1 %v439_v1  ;;  %v395_v4 = vld [vmem:[#allocation2 + $0x10] sm:$0xff]   ;;  %v396_v5 = vld [vmem:[#allocation2 + $0x18] sm:$0xff]   ;;  %v441_v6 = vmov 1   ;;  %v442_v7 = vmov 3   ;;  %v397_v8 = vld [vmem:[#allocation2 + $0x20] sm:$0xff]   ;;  %vm443_vm0 = vmmov 0  }
  0x14   :  { %341 = vmatprep.subr.bf16.mxu0 %v440_v2  ;;  %361 = vmatprep.subr.bf16.mxu1 %v440_v2  ;;  %v398_v9 = vld [vmem:[#allocation2 + $0x28] sm:$0xff]   ;;  %v399_v10 = vld [vmem:[#allocation2 + $0x30] sm:$0xff]   ;;  %v403_v11 = vld [vmem:[#allocation2 + $0x58] sm:$0xff]   ;;  %v73_v21 = vshrl.u32 %v72_v20, 7  ;;  %vm300_vm1 = vcmask 64512  }
  0x15   :  { %69 = vperm.xlu0 %390, %v26_v3   ;;  %93 = vperm.xlu1 %392, %v26_v3   ;;  %v400_v12 = vld [vmem:[#allocation2 + $0x38] sm:$0xff]   ;;  %v404_v13 = vld [vmem:[#allocation2 + $0x60] sm:$0xff]   ;;  %v405_v15 = vld [vmem:[#allocation2 + $0x68] sm:$0xff]  }
  0x16   :  { %342 = vmatpush3.bf16.msra.mxu0 %v395_v4  ;;  %357 = vmatprep.mubr.msk.bf16.mxu0 %vm443_vm0, %v440_v2  ;;  %v401_v14 = vld [vmem:[#allocation2 + $0x40] sm:$0xff]   ;;  %v402_v16 = vld [vmem:[#allocation2 + $0x48] sm:$0xff]   ;;  %v406_v17 = vld [vmem:[#allocation2 + $0x70] sm:$0xff]   ;;  %v74_v24 = vsub.s32 0, %v73_v21  ;;  %v88_v28 = vsub.s32 1, %v73_v21  ;;  %v98_v30 = vsub.s32 2, %v73_v21 }
  0x17   :  { %343 = vmatprep.subr.bf16.mxu0 %v440_v2  ;;  %377 = vmatprep.mubr.msk.bf16.mxu1 %vm443_vm0, %v440_v2  ;;  %v407_v18 = vld [vmem:[#allocation2 + $0x78] sm:$0xff]   ;;  %v408_v19 = vld [vmem:[#allocation2 + $0x80] sm:$0xff]   ;;  %v29_v25 = vld [vmem:[#allocation2 + $0x8] sm:$0x1]  ;;  %v108_v32 = vsub.s32 3, %v73_v21 }
  0x18   :  { %362 = vmatpush3.bf16.msra.mxu1 %v403_v11  ;;  %v27_v22 = vld [vmem:[#allocation2] sm:$0x3]  ;;  %v30_v26 = vunpack.c.l.bf16 %v29_v25  ;;  %v409_v49 = vld [vmem:[#allocation2 + $0x88] sm:$0xff]   ;;  %v410_v50 = vld [vmem:[#allocation2 + $0x90] sm:$0xff]  }
  0x19   :  { %391 = vset.pattern.permute.xlu0 %v441_v6  ;;  %393 = vset.pattern.permute.xlu1 %v442_v7  ;;  %v28_v23 = vunpack.c.l.bf16 %v27_v22  ;;  %v47_v51 = vld [vmem:[#allocation2 + $0x50] sm:$0x1]  ;;  %v65_v61 = vld [vmem:[#allocation2 + $0x98] sm:$0x1] }
  0x1a   :  { %83 = vperm.xlu0 %391, %v26_v3   ;;  %103 = vperm.xlu1 %393, %v26_v3   ;;  %v80_v33 = vrot.slane %v30_v26, %v74_v24  ;;  %v48_v52 = vunpack.c.l.bf16 %v47_v51  ;;  %v66_v62 = vunpack.c.l.bf16 %v65_v61 }
  0x1b   :  { %344 = vmatpush3.bf16.msra.mxu0 %v396_v5  ;;  %363 = vmatprep.subr.bf16.mxu1 %v440_v2  ;;  %v75_v27 = vrot.slane %v28_v23, %v74_v24  ;;  %v89_v35 = vrot.slane %v28_v23, %v88_v28  ;;  %v99_v36 = vrot.slane %v28_v23, %v98_v30 }
  0x1c   :  { %345 = vmatprep.subr.bf16.mxu0 %v440_v2  ;;  %364 = vmatpush3.bf16.msra.mxu1 %v404_v13  ;;  %v109_v37 = vrot.slane %v28_v23, %v108_v32  ;;  %v117_v53 = vrot.slane %v48_v52, %v74_v24  ;;  %v211_v63 = vrot.slane %v66_v62, %v74_v24 }
  0x1d   :  { %365 = vmatprep.subr.bf16.mxu1 %v440_v2 }
  0x1e   :  { %394 = vset.pattern.permute.xlu0 %v442_v7 }
  0x1f   :  { %346 = vmatpush3.bf16.msra.mxu0 %v397_v8 }
  0x20   :  { %347 = vmatprep.subr.bf16.mxu0 %v440_v2  ;;  %366 = vmatpush3.bf16.msra.mxu1 %v405_v15 }
  0x21   :  { %367 = vmatprep.subr.bf16.mxu1 %v440_v2 }
  0x23   :  { %348 = vmatpush3.bf16.msra.mxu0 %v398_v9 }
  0x24   :  { %349 = vmatprep.subr.bf16.mxu0 %v440_v2  ;;  %368 = vmatpush3.bf16.msra.mxu1 %v406_v17 }
  0x25   :  { %369 = vmatprep.subr.bf16.mxu1 %v440_v2 }
  0x27   :  { %350 = vmatpush3.bf16.msra.mxu0 %v399_v10 }
  0x28   :  { %351 = vmatprep.subr.bf16.mxu0 %v440_v2  ;;  %370 = vmatpush3.bf16.msra.mxu1 %v407_v18 }
  0x29   :  { %371 = vmatprep.subr.bf16.mxu1 %v440_v2 }
  0x2b   :  { %352 = vmatpush3.bf16.msra.mxu0 %v400_v12 }
  0x2c   :  { %353 = vmatprep.subr.bf16.mxu0 %v440_v2  ;;  %372 = vmatpush3.bf16.msra.mxu1 %v408_v19 }
  0x2d   :  { %373 = vmatprep.subr.bf16.mxu1 %v440_v2 }
  0x2f   :  { %354 = vmatpush3.bf16.msra.mxu0 %v401_v14 }
  0x30   :  { %355 = vmatprep.subr.bf16.mxu0 %v440_v2  ;;  %374 = vmatpush3.bf16.msra.mxu1 %v409_v49 }
  0x31   :  { %375 = vmatprep.subr.bf16.mxu1 %v440_v2 }
  0x33   :  { %356 = vmatpush3.bf16.msra.mxu0 %v402_v16 }
  0x34   :  { %376 = vmatpush3.bf16.msra.mxu1 %v410_v50 }
  0x94   :  { %v70_v29 = vpop.permute.xlu0 %69  ;;  %v94_v31 = vpop.permute.xlu1 %93 }
  0x95   :  { %v76_v34 = vmul.f32 %v75_v27, %v70_v29  ;;  %v100_v42 = vmul.f32 %v99_v36, %v94_v31 }
  0x97   :  { %v81_v40 = vadd.f32 %v80_v33, %v76_v34 }
  0x99   :  { %v84_v38 = vpop.permute.xlu0 %83  ;;  %v104_v39 = vpop.permute.xlu1 %103 }
  0x9a   :  { %v90_v41 = vmul.f32 %v89_v35, %v84_v38  ;;  %v110_v44 = vmul.f32 %v109_v37, %v104_v39 }
  0x9c   :  { %v91_v43 = vadd.f32 %v90_v41, %v81_v40 }
  0x9e   :  { %v101_v45 = vadd.f32 %v100_v42, %v91_v43 }
  0xa0   :  { %v111_v46 = vadd.f32 %v110_v44, %v101_v45 }
  0xa2   :  { %v112_v47 = vmax.f32 %v111_v46, 0.0 }
  0xa4   :  { %v113_v48 = vpack.c.bf16 %v112_v47, %v112_v47 }
  0xa6   :  { %358 = vmatmul.mubr.bf16.vlgmr.msra.gmra.mrb[0].mxu0 %v113_v48 }
 0x179   :  { %v200_v54 = vpop.f32.mrb[0].mxu0 }
 0x17a   :  { %v201_v55 = vadd.f32 %v200_v54, %v117_v53  ;;  %v359_v56 = vpop.f32.mrb[1].mxu0 }
 0x17b   :  { %v203_v57 = vpop.f32.mrb[2].mxu0 }
 0x17c   :  { %v206_v58 = vmax.f32 %v201_v55, 0.0  ;;  %v360_v59 = vpop.f32.mrb[3].mxu0 }
 0x17e   :  { %v207_v60 = vpack.c.bf16 %v206_v58, %v206_v58 }
 0x180   :  { %378 = vmatmul.mubr.bf16.vlgmr.msra.gmra.mrb[0].mxu1 %v207_v60 }
 0x253   :  { %v294_v0 = vpop.f32.mrb[0].mxu1 }
 0x254   :  { %v295_v1 = vadd.f32 %v294_v0, %v211_v63  ;;  %v379_v2 = vpop.f32.mrb[1].mxu1 }
 0x255   :  { %v297_v3 = vpop.f32.mrb[2].mxu1 }
 0x256   :  { %301 = vst.msk [vmem:[%s497_s2] sm:$0xff] %vm300_vm1, %v295_v1  ;;  %v380_v4 = vpop.f32.mrb[3].mxu1 }
 0x257   :  { %306 = vsyncpa [#allocation3], 1 }

</bundles_post_ra>
